<compile_context>
chip_gen: v5e
topology: v5e:2x2
jax: 0.10.0
libtpu: 0.0.40
codegen_flags: <defaults>
</compile_context>

<pallas_src>
import functools

import jax
import jax.numpy as jnp
import numpy as np
from jax.experimental import pallas as pl
from jax.experimental.pallas import tpu as pltpu


def _round_up(n, m):
    return (n + m - 1) // m * m


def _choose_tile_b(B):
    """Batch tile: large enough to amortize per-grid-step overhead, multiple of 16
    for bf16 packing, and (when B allows) small enough that the grid has >=2 steps
    so both v7x TensorCores get work. VMEM use is tiny in all cases."""
    if B <= 32:
        return _round_up(B, 8)
    return max(16, min(512, _round_up(pl.cdiv(B, 2), 16)))


def binary_ann_kernel(x_ref, w1_ref, b1_ref, w2_ref, b2_ref, w3_ref, b3_ref, o_ref):
    # fc1 + ReLU in f32 (K = input_size is small; accuracy essentially free).
    h1 = jnp.dot(x_ref[...], w1_ref[...], preferred_element_type=jnp.float32)
    h1 = jnp.maximum(h1 + b1_ref[...], 0.0)
    # fc2 + ReLU: bf16 MXU operands, f32 accumulate + epilogue.
    h2 = jnp.dot(h1.astype(jnp.bfloat16), w2_ref[...], preferred_element_type=jnp.float32)
    h2 = jnp.maximum(h2 + b2_ref[...], 0.0)
    # fc3: lane-dense 128-wide padded weights on the MXU; store only the real
    # n_out columns back to HBM (masked narrow store, negligible vs MXU work).
    out = jnp.dot(h2.astype(jnp.bfloat16), w3_ref[...], preferred_element_type=jnp.float32)
    out = out + b3_ref[...]
    o_ref[...] = out[:, : o_ref.shape[-1]].astype(o_ref.dtype)


def prepare_params(params):
    """One-time conversion (outside the hot path) of f32 params to kernel layout:
    weights already (fan_in, fan_out); cast fc2/fc3 weights to bf16; zero-pad fc3
    weight/bias columns to a lane-dense 128."""
    w1, b1, w2, b2, w3, b3 = params
    hidden, n_out = w3.shape
    out_pad = max(128, _round_up(n_out, 128))
    w3p = jnp.zeros((hidden, out_pad), jnp.float32).at[:, :n_out].set(w3)
    b3p = jnp.zeros((1, out_pad), jnp.float32).at[:, :n_out].set(b3)
    prepared = (
        w1.astype(jnp.float32),
        b1.astype(jnp.float32),
        w2.astype(jnp.bfloat16),
        b2.astype(jnp.float32),
        w3p.astype(jnp.bfloat16),
        b3p,
    )
    return jax.block_until_ready(prepared), n_out


@functools.partial(jax.jit, static_argnames=("n_out",))
def binary_ann_forward(x, prepared, n_out=2):
    """Forward pass matching PyTorch BinaryANN: relu(fc1) -> relu(fc2) -> fc3."""
    w1, b1, w2, b2, w3p, b3p = prepared
    B, d_in = x.shape
    hidden = w1.shape[1]
    out_pad = w3p.shape[1]

    tile_b = _choose_tile_b(B)
    grid = (pl.cdiv(B, tile_b),)

    flops = 2 * B * (d_in * hidden + hidden * hidden + hidden * out_pad)
    bytes_accessed = (
        x.size * 4
        + w1.size * 4 + w2.size * 2 + w3p.size * 2
        + b1.size * 4 + b2.size * 4 + b3p.size * 4
        + B * n_out * 4
    )

    return pl.pallas_call(
        binary_ann_kernel,
        out_shape=jax.ShapeDtypeStruct((B, n_out), jnp.float32),
        grid=grid,
        in_specs=[
            pl.BlockSpec((tile_b, d_in), lambda i: (i, 0)),     # x: tiled over batch
            pl.BlockSpec((d_in, hidden), lambda i: (0, 0)),     # w1 (f32): VMEM-resident
            pl.BlockSpec((1, hidden), lambda i: (0, 0)),        # b1: resident
            pl.BlockSpec((hidden, hidden), lambda i: (0, 0)),   # w2 (bf16): resident
            pl.BlockSpec((1, hidden), lambda i: (0, 0)),        # b2: resident
            pl.BlockSpec((hidden, out_pad), lambda i: (0, 0)),  # w3 padded (bf16): resident
            pl.BlockSpec((1, out_pad), lambda i: (0, 0)),       # b3 padded: resident
        ],
        out_specs=pl.BlockSpec((tile_b, n_out), lambda i: (i, 0)),  # narrow, unpadded
        compiler_params=pltpu.CompilerParams(
            dimension_semantics=("parallel",),   # megacore sharding on v7x
        ),
        cost_estimate=pl.CostEstimate(
            flops=flops, transcendentals=0, bytes_accessed=bytes_accessed
        ),
    )(x, w1, b1, w2, b2, w3p, b3p)


def init_params(key, input_size, hidden_size=128, out_size=2):
    """Deterministic init matching PyTorch Linear's U(-1/sqrt(fan_in), +1/sqrt(fan_in)).
    Weights are returned already transposed to (fan_in, fan_out) layout, f32."""
    def linear(k, fan_in, fan_out):
        kw, kb = jax.random.split(k)
        bound = 1.0 / np.sqrt(fan_in)
        w = jax.random.uniform(kw, (fan_in, fan_out), jnp.float32, -bound, bound)
        b = jax.random.uniform(kb, (1, fan_out), jnp.float32, -bound, bound)
        return w, b

    k1, k2, k3 = jax.random.split(key, 3)
    w1, b1 = linear(k1, input_size, hidden_size)
    w2, b2 = linear(k2, hidden_size, hidden_size)
    w3, b3 = linear(k3, hidden_size, out_size)
    return (w1, b1, w2, b2, w3, b3)


def reference_forward(x, params):
    w1, b1, w2, b2, w3, b3 = params
    h1 = jnp.maximum(x @ w1 + b1, 0.0)
    h2 = jnp.maximum(h1 @ w2 + b2, 0.0)
    return h2 @ w3 + b3


if __name__ == "__main__":
    key = jax.random.PRNGKey(0)
    kx, kp = jax.random.split(key)

    batch = 8
    input_size = 32
    hidden_size = 128

    x = jax.random.normal(kx, (batch, input_size), jnp.float32)
    params = init_params(kp, input_size, hidden_size)
    prepared, n_out = prepare_params(params)

    out = jax.block_until_ready(binary_ann_forward(x, prepared, n_out=n_out))
    ref = jax.block_until_ready(reference_forward(x, params))

    assert out.shape == (batch, 2)
    # fc2/fc3 use bf16 MXU operands -> looser tolerance than a pure-f32 matmul
    np.testing.assert_allclose(np.asarray(out), np.asarray(ref), rtol=5e-2, atol=5e-2)

    print("KERNEL_OK")
</pallas_src>

<mosaic_0001>
module attributes {stable_mosaic.version = 11 : i64} {
  func.func @binary_ann_kernel(%arg0: i32, %arg1: memref<8x32xf32, #tpu.memory_space<vmem>>, %arg2: memref<32x128xf32, #tpu.memory_space<vmem>>, %arg3: memref<1x128xf32, #tpu.memory_space<vmem>>, %arg4: memref<128x128xbf16, #tpu.memory_space<vmem>>, %arg5: memref<1x128xf32, #tpu.memory_space<vmem>>, %arg6: memref<128x128xbf16, #tpu.memory_space<vmem>>, %arg7: memref<1x128xf32, #tpu.memory_space<vmem>>, %arg8: memref<8x2xf32, #tpu.memory_space<vmem>>) attributes {dimension_semantics = [#tpu.dimension_semantics<parallel>], iteration_bounds = array<i64: 1>, scalar_prefetch = 0 : i64, scratch_operands = 0 : i64, tpu.core_type = #tpu.core_type<tc>, window_params = [{transform_indices = @transform_0, window_bounds = array<i64: 8, 32>}, {pipeline_mode = #tpu.pipeline_mode<synchronous>, transform_indices = @transform_1, window_bounds = array<i64: 32, 128>}, {pipeline_mode = #tpu.pipeline_mode<synchronous>, transform_indices = @transform_2, window_bounds = array<i64: 1, 128>}, {pipeline_mode = #tpu.pipeline_mode<synchronous>, transform_indices = @transform_3, window_bounds = array<i64: 128, 128>}, {pipeline_mode = #tpu.pipeline_mode<synchronous>, transform_indices = @transform_4, window_bounds = array<i64: 1, 128>}, {pipeline_mode = #tpu.pipeline_mode<synchronous>, transform_indices = @transform_5, window_bounds = array<i64: 128, 128>}, {pipeline_mode = #tpu.pipeline_mode<synchronous>, transform_indices = @transform_6, window_bounds = array<i64: 1, 128>}, {transform_indices = @transform_7, window_bounds = array<i64: 8, 2>}]} {
    %c0 = arith.constant 0 : index
    %c0_0 = arith.constant 0 : index
    %0 = vector.load %arg1[%c0, %c0_0] : memref<8x32xf32, #tpu.memory_space<vmem>>, vector<8x32xf32>
    %c0_1 = arith.constant 0 : index
    %c0_2 = arith.constant 0 : index
    %1 = vector.load %arg2[%c0_1, %c0_2] : memref<32x128xf32, #tpu.memory_space<vmem>>, vector<32x128xf32>
    %cst = arith.constant dense<0.000000e+00> : vector<8x128xf32>
    %2 = tpu.matmul %0, %1, %cst {dimension_numbers = #tpu.dot_dimension_numbers<[1], [0], [0], [1], [0, 0, 1, 1], [], []>} : vector<8x32xf32>, vector<32x128xf32>, vector<8x128xf32> -> vector<8x128xf32>
    %c0_3 = arith.constant 0 : index
    %c0_4 = arith.constant 0 : index
    %3 = vector.load %arg3[%c0_3, %c0_4] : memref<1x128xf32, #tpu.memory_space<vmem>>, vector<1x128xf32>
    %4 = vector.broadcast %3 : vector<1x128xf32> to vector<8x128xf32>
    %5 = arith.addf %2, %4 : vector<8x128xf32>
    %cst_5 = arith.constant 0.000000e+00 : f32
    %6 = vector.broadcast %cst_5 : f32 to vector<8x128xf32>
    %7 = arith.maximumf %5, %6 : vector<8x128xf32>
    %8 = arith.truncf %7 : vector<8x128xf32> to vector<8x128xbf16>
    %c0_6 = arith.constant 0 : index
    %c0_7 = arith.constant 0 : index
    %9 = vector.load %arg4[%c0_6, %c0_7] : memref<128x128xbf16, #tpu.memory_space<vmem>>, vector<128x128xbf16>
    %cst_8 = arith.constant dense<0.000000e+00> : vector<8x128xf32>
    %10 = tpu.matmul %8, %9, %cst_8 {dimension_numbers = #tpu.dot_dimension_numbers<[1], [0], [0], [1], [0, 0, 1, 1], [], []>} : vector<8x128xbf16>, vector<128x128xbf16>, vector<8x128xf32> -> vector<8x128xf32>
    %c0_9 = arith.constant 0 : index
    %c0_10 = arith.constant 0 : index
    %11 = vector.load %arg5[%c0_9, %c0_10] : memref<1x128xf32, #tpu.memory_space<vmem>>, vector<1x128xf32>
    %12 = vector.broadcast %11 : vector<1x128xf32> to vector<8x128xf32>
    %13 = arith.addf %10, %12 : vector<8x128xf32>
    %cst_11 = arith.constant 0.000000e+00 : f32
    %14 = vector.broadcast %cst_11 : f32 to vector<8x128xf32>
    %15 = arith.maximumf %13, %14 : vector<8x128xf32>
    %16 = arith.truncf %15 : vector<8x128xf32> to vector<8x128xbf16>
    %c0_12 = arith.constant 0 : index
    %c0_13 = arith.constant 0 : index
    %17 = vector.load %arg6[%c0_12, %c0_13] : memref<128x128xbf16, #tpu.memory_space<vmem>>, vector<128x128xbf16>
    %cst_14 = arith.constant dense<0.000000e+00> : vector<8x128xf32>
    %18 = tpu.matmul %16, %17, %cst_14 {dimension_numbers = #tpu.dot_dimension_numbers<[1], [0], [0], [1], [0, 0, 1, 1], [], []>} : vector<8x128xbf16>, vector<128x128xbf16>, vector<8x128xf32> -> vector<8x128xf32>
    %c0_15 = arith.constant 0 : index
    %c0_16 = arith.constant 0 : index
    %19 = vector.load %arg7[%c0_15, %c0_16] : memref<1x128xf32, #tpu.memory_space<vmem>>, vector<1x128xf32>
    %20 = vector.broadcast %19 : vector<1x128xf32> to vector<8x128xf32>
    %21 = arith.addf %18, %20 : vector<8x128xf32>
    %22 = vector.extract_strided_slice %21 {offsets = [0, 0], sizes = [8, 2], strides = [1, 1]} : vector<8x128xf32> to vector<8x2xf32>
    %c0_17 = arith.constant 0 : index
    %c0_18 = arith.constant 0 : index
    %23 = vector.load %arg8[%c0_17, %c0_18] : memref<8x2xf32, #tpu.memory_space<vmem>>, vector<8x2xf32>
    tpu.vector_store %arg8[%c0_17, %c0_18], %22 {strides = array<i32>} : memref<8x2xf32, #tpu.memory_space<vmem>>, vector<8x2xf32>,
    return
  }
  func.func @transform_0(%arg0: i32) -> (i32, i32) {
    %c0_i32 = arith.constant 0 : i32
    %c0_i32_0 = arith.constant 0 : i32
    return %arg0, %c0_i32 : i32, i32
  }
  func.func @transform_1(%arg0: i32) -> (i32, i32) {
    %c0_i32 = arith.constant 0 : i32
    %c0_i32_0 = arith.constant 0 : i32
    %c0_i32_1 = arith.constant 0 : i32
    return %c0_i32, %c0_i32_0 : i32, i32
  }
  func.func @transform_2(%arg0: i32) -> (i32, i32) {
    %c0_i32 = arith.constant 0 : i32
    %c0_i32_0 = arith.constant 0 : i32
    %c0_i32_1 = arith.constant 0 : i32
    return %c0_i32, %c0_i32_0 : i32, i32
  }
  func.func @transform_3(%arg0: i32) -> (i32, i32) {
    %c0_i32 = arith.constant 0 : i32
    %c0_i32_0 = arith.constant 0 : i32
    %c0_i32_1 = arith.constant 0 : i32
    return %c0_i32, %c0_i32_0 : i32, i32
  }
  func.func @transform_4(%arg0: i32) -> (i32, i32) {
    %c0_i32 = arith.constant 0 : i32
    %c0_i32_0 = arith.constant 0 : i32
    %c0_i32_1 = arith.constant 0 : i32
    return %c0_i32, %c0_i32_0 : i32, i32
  }
  func.func @transform_5(%arg0: i32) -> (i32, i32) {
    %c0_i32 = arith.constant 0 : i32
    %c0_i32_0 = arith.constant 0 : i32
    %c0_i32_1 = arith.constant 0 : i32
    return %c0_i32, %c0_i32_0 : i32, i32
  }
  func.func @transform_6(%arg0: i32) -> (i32, i32) {
    %c0_i32 = arith.constant 0 : i32
    %c0_i32_0 = arith.constant 0 : i32
    %c0_i32_1 = arith.constant 0 : i32
    return %c0_i32, %c0_i32_0 : i32, i32
  }
  func.func @transform_7(%arg0: i32) -> (i32, i32) {
    %c0_i32 = arith.constant 0 : i32
    %c0_i32_0 = arith.constant 0 : i32
    return %arg0, %c0_i32 : i32, i32
  }
}

</mosaic_0001>

<bundles_post_ra>
// kernel: binary_ann_forward.1
= control target key start
LH: loop header
LB: loop body
LE: loop exit
PB: predicated region body
PF: predicated region fallthrough
CT: control target
= control target key end

     0   :  { %12 = vsyncpa [#allocation3], 0  ;;  %s561_s0 = inlined_call_operand.hbm [shape: f32[8,32], index: 0, kind: input, shape index: {}]   ;;  %s562_s1 = inlined_call_operand.hbm [shape: f32[32,128], index: 1, kind: input, shape index: {}]   ;;  %s563_s2 = inlined_call_operand.vmem [shape: f32[1,128], index: 2, kind: input, shape index: {}]   ;;  %s564_s3 = inlined_call_operand.hbm [shape: bf16[128,128], index: 3, kind: input, shape index: {}]   ;;  %s565_s4 = inlined_call_operand.vmem [shape: f32[1,128], index: 4, kind: input, shape index: {}]   ;;  %s566_s5 = inlined_call_operand.hbm [shape: bf16[128,128], index: 5, kind: input, shape index: {}]   ;;  %s567_s6 = inlined_call_operand.vmem [shape: f32[1,128], index: 6, kind: input, shape index: {}]   ;;  %s568_s7 = inlined_call_operand.vmem [shape: f32[8,2], index: 7, kind: output, shape index: {}]  }
   0x1   :  { %13 = vsyncpa [#allocation5], 0  ;;  %s30_s26 = sshll.u32 %s562_s1, 4  ;;  %s31_s26 = int_to_ptr.hbm [resolvable:$true] %s30_s26 }
   0x2   :  { %14 = vsyncpa [#allocation8], 0  ;;  %s489_s27 = smov [#allocation4]   ;;  %s20_s8 = sshll.u32 %s561_s0, 4  ;;  %s21_s8 = int_to_ptr.hbm [resolvable:$true] %s20_s8 }
   0x3   :  { %s32_s28 = sshll.u32 %s489_s27, 4  ;;  %s490_s9 = smov 128   ;;  %s33_s28 = int_to_ptr.vmem [resolvable:$true] %s32_s28 }
   0x4   :  { %s491_s10 = smov 8   ;;  %s492_s11 = smov [#allocation2]  }
   0x5   :  { %38 = dma.hbm_to_vmem [thread:$0]  %s31_s26, 512, %s33_s28, [#allocation5], %s490_s9, %s490_s9, %s491_s10  }
   0x6   :  { %s22_s12 = sshll.u32 %s492_s11, 4  ;;  %s45_s15 = sshll.u32 %s564_s3, 4  ;;  %s23_s12 = int_to_ptr.vmem [resolvable:$true] %s22_s12  ;;  %s46_s15 = int_to_ptr.hbm [resolvable:$true] %s45_s15 }
   0x7   :  { %25 = dma.hbm_to_vmem [thread:$0]  %s21_s8, 128, %s23_s12, [#allocation3]  }
   0x8   :  { %s493_s1 = smov [#allocation6]   ;;  %s60_s0 = sshll.u32 %s566_s5, 4  ;;  %s61_s0 = int_to_ptr.hbm [resolvable:$true] %s60_s0 }
   0x9   :  { %s47_s16 = sshll.u32 %s493_s1, 4  ;;  %s494_s19 = smov 64   ;;  %s48_s16 = int_to_ptr.vmem [resolvable:$true] %s47_s16 }
   0xa   :  { %s495_s20 = smov 4   ;;  %s496_s21 = smov [#allocation7]  }
   0xb   :  { %53 = dma.hbm_to_vmem [thread:$0]  %s46_s15, 1024, %s48_s16, [#allocation5], %s494_s19, %s494_s19, %s495_s20  }
   0xc   :  { %s62_s22 = sshll.u32 %s496_s21, 4  ;;  %s63_s22 = int_to_ptr.vmem [resolvable:$true] %s62_s22 }
   0xd   :  { %68 = dma.hbm_to_vmem [thread:$0]  %s61_s0, 1024, %s63_s22, [#allocation8], %s494_s19, %s494_s19, %s495_s20  }
   0xe   :  { %483 = dma.done.wait [#allocation3], 128  }
   0xf   :  { %484 = vsyncadd [#allocation3], 4294967168 }
  0x10   :  { %485 = dma.done.wait [#allocation5], 1536  }
  0x11   :  { %486 = vsyncadd [#allocation5], 4294965760 }
  0x12   :  { %487 = dma.done.wait [#allocation8], 1024  }
  0x13   :  { %488 = vsyncadd [#allocation8], 4294966272  ;;  %v91_v0 = vld [vmem:[#allocation4 + $0x18] sm:$0xff]  ;;  %v90_v1 = vld [vmem:[#allocation4 + $0x10] sm:$0xff]  ;;  %vm96_vm0 = vcmask 261120   ;;  %vm286_vm1 = vcmask 15360  }
  0x14   :  { %112 = vmatpush.msra.mxu0 %v91_v0  ;;  %v367_v2 = vld [vmem:[#allocation6 + $0x38] sm:$0xff]  ;;  %v89_v3 = vld [vmem:[#allocation4 + $0x8] sm:$0xff]  ;;  %v366_v4 = vld [vmem:[#allocation6 + $0x30] sm:$0xff] }
  0x15   :  { %190 = vmatpush.bf16.msra.mxu1 %v367_v2  ;;  %v88_v5 = vld [vmem:[#allocation4] sm:$0xff]  ;;  %v87_v6 = vld [vmem:[#allocation2] sm:$0xff]  ;;  %v365_v7 = vld [vmem:[#allocation6 + $0x28] sm:$0xff] }
  0x16   :  { %113 = vmatpush.msra.mxu0 %v90_v1  ;;  %v364_v8 = vld [vmem:[#allocation6 + $0x20] sm:$0xff]  ;;  %v363_v9 = vld [vmem:[#allocation6 + $0x18] sm:$0xff]  ;;  %v362_v10 = vld [vmem:[#allocation6 + $0x10] sm:$0xff] }
  0x17   :  { %v361_v11 = vld [vmem:[#allocation6 + $0x8] sm:$0xff]  ;;  %v360_v12 = vld [vmem:[#allocation6] sm:$0xff]  ;;  %v375_v13 = vld [vmem:[#allocation7 + $0x38] sm:$0xff] }
  0x18   :  { %114 = vmatpush.msra.mxu0 %v89_v3  ;;  %273 = vmatpush.bf16.msra.mxu2 %v375_v13  ;;  %v374_v14 = vld [vmem:[#allocation7 + $0x30] sm:$0xff]  ;;  %v373_v15 = vld [vmem:[#allocation7 + $0x28] sm:$0xff]  ;;  %v372_v16 = vld [vmem:[#allocation7 + $0x20] sm:$0xff] }
  0x19   :  { %191 = vmatpush.bf16.msra.mxu1 %v366_v4  ;;  %v371_v17 = vld [vmem:[#allocation7 + $0x18] sm:$0xff]  ;;  %v370_v18 = vld [vmem:[#allocation7 + $0x10] sm:$0xff]  ;;  %v369_v24 = vld [vmem:[#allocation7 + $0x8] sm:$0xff] }
  0x1a   :  { %115 = vmatpush.msra.mxu0 %v88_v5  ;;  %v384_v19 = vld [vmem:[%s563_s2] ss:$0 sm:$0xff]  ;;  %v368_v25 = vld [vmem:[#allocation7] sm:$0xff] }
  0x1b   :  { %295 = vmatmul.msk.f32.vlgmr.msra.gmra.mxu0 %vm96_vm0, %v87_v6  ;;  %v385_v26 = vld [vmem:[%s565_s4] ss:$0 sm:$0xff] }
  0x1c   :  { %274 = vmatpush.bf16.msra.mxu2 %v374_v14  ;;  %v386_v32 = vld [vmem:[%s567_s6] ss:$0 sm:$0xff] }
  0x1d   :  { %192 = vmatpush.bf16.msra.mxu1 %v365_v7 }
  0x20   :  { %275 = vmatpush.bf16.msra.mxu2 %v373_v15 }
  0x21   :  { %193 = vmatpush.bf16.msra.mxu1 %v364_v8 }
  0x24   :  { %276 = vmatpush.bf16.msra.mxu2 %v372_v16 }
  0x25   :  { %194 = vmatpush.bf16.msra.mxu1 %v363_v9 }
  0x28   :  { %277 = vmatpush.bf16.msra.mxu2 %v371_v17 }
  0x29   :  { %195 = vmatpush.bf16.msra.mxu1 %v362_v10 }
  0x2c   :  { %278 = vmatpush.bf16.msra.mxu2 %v370_v18 }
  0x2d   :  { %196 = vmatpush.bf16.msra.mxu1 %v361_v11 }
  0x30   :  { %279 = vmatpush.bf16.msra.mxu2 %v369_v24 }
  0x31   :  { %197 = vmatpush.bf16.msra.mxu1 %v360_v12 }
  0x34   :  { %280 = vmatpush.bf16.msra.mxu2 %v368_v25 }
  0x98   :  { %v117_v20 = vpop.f32.mrf.mxu0 }
  0x99   :  { %v118_v21 = vadd.f32 %v384_v19, %v117_v20 }
  0x9b   :  { %v120_v22 = vmax.f32 %v118_v21, 0.0 }
  0x9d   :  { %v121_v23 = vpack.c.bf16 %v120_v22, %v120_v22 }
  0x9f   :  { %198 = vmatmul.bf16.vlgmr.msra.gmra.mxu1 %v121_v23 }
 0x11c   :  { %v199_v27 = vpop.f32.mrf.mxu1 }
 0x11d   :  { %v200_v28 = vadd.f32 %v385_v26, %v199_v27 }
 0x11f   :  { %v203_v29 = vmax.f32 %v200_v28, 0.0 }
 0x121   :  { %v204_v30 = vpack.c.bf16 %v203_v29, %v203_v29 }
 0x123   :  { %281 = vmatmul.bf16.vlgmr.msra.gmra.mxu2 %v204_v30 }
 0x124   :  { %v201_v31 = vpop.f32.mrf.mxu1 }
 0x1a6   :  { %v282_v33 = vpop.f32.mrf.mxu2 }
 0x1a7   :  { %v283_v34 = vadd.f32 %v386_v32, %v282_v33 }
 0x1a9   :  { %287 = vst.msk [vmem:[%s568_s7] sm:$0xff] %vm286_vm1, %v283_v34 }
 0x1ae   :  { %v284_v35 = vpop.f32.mrf.mxu2 }
 0x1af   :  { %292 = vsyncpa [#allocation3], 1 }
 0x1b0   :  { %293 = vsyncpa [#allocation5], 1 }
 0x1b1   :  { %294 = vsyncpa [#allocation8], 1 }

</bundles_post_ra>
